<compile_context>
chip_gen: v5e
topology: v5e:2x2
jax: 0.10.0
libtpu: 0.0.40
codegen_flags: <defaults>
</compile_context>

<pallas_src>
import jax
import jax.numpy as jnp
from jax.experimental import pallas as pl
from jax.experimental.pallas import tpu as pltpu


def _round_up(n, m):
    return ((n + m - 1) // m) * m


def _default_elementwise_dtype():
    """bf16 elementwise only on generations with a bf16 VPU (v6e / v7x)."""
    try:
        kind = jax.devices()[0].device_kind.lower()
    except Exception:
        return jnp.float32
    if ("v6" in kind) or ("v7" in kind) or ("7x" in kind):
        return jnp.bfloat16
    return jnp.float32


def _mlp_kernel(x_ref, w1_ref, b1_ref, w2_ref, b2_ref, w3_ref, b3_ref, o_ref):
    cd = w2_ref.dtype          # MXU compute dtype (bf16)
    ew1 = b1_ref.dtype         # elementwise dtype (f32 on v5e, bf16 on v6e/v7x)
    ew2 = b2_ref.dtype

    # Layer 1: bf16 MXU inputs, f32 accumulate; bias/ReLU in the gated dtype.
    h1 = jnp.dot(x_ref[...].astype(w1_ref.dtype), w1_ref[...],
                 preferred_element_type=jnp.float32)
    h1 = jnp.maximum(h1.astype(ew1) + b1_ref[...], 0.0).astype(cd)
    # Layer 2.
    h2 = jnp.dot(h1, w2_ref[...], preferred_element_type=jnp.float32)
    h2 = jnp.maximum(h2.astype(ew2) + b2_ref[...], 0.0).astype(cd)
    # Output layer: narrow (A padded to 8) columns, bias-add in f32, no activation.
    out = jnp.dot(h2, w3_ref[...], preferred_element_type=jnp.float32)
    o_ref[...] = (out + b3_ref[...]).astype(o_ref.dtype)


def init_qnetwork_params(state_size, action_size, seed=0):
    """Deterministic init mimicking nn.Linear default (uniform +/- 1/sqrt(fan_in)).
    Weights are (in_features, out_features); biases are (1, out)."""
    sizes = [state_size, 64, 64, action_size]  # hidden_sizes = [64, 64]
    key = jax.random.PRNGKey(seed)
    params = []
    for i in range(len(sizes) - 1):
        fan_in, fan_out = sizes[i], sizes[i + 1]
        key, kw, kb = jax.random.split(key, 3)
        bound = 1.0 / jnp.sqrt(fan_in)
        w = jax.random.uniform(kw, (fan_in, fan_out), jnp.float32, -bound, bound)
        b = jax.random.uniform(kb, (1, fan_out), jnp.float32, -bound, bound)
        params += [w, b]
    return tuple(params)


def pack_qnetwork_params(params, compute_dtype=jnp.bfloat16,
                         elementwise_dtype=None, hidden_pad=128):
    """Zero-pad hidden width to 128 (lane-dense) and the output width only to
    a multiple of 8; cast weights to the MXU dtype and the hidden biases to the
    per-generation elementwise dtype. Done once, offline."""
    if elementwise_dtype is None:
        elementwise_dtype = _default_elementwise_dtype()
    w1, b1, w2, b2, w3, b3 = params
    state_size = w1.shape[0]
    action_size = w3.shape[1]
    hid = hidden_pad
    out_pad = _round_up(action_size, 8)

    def pad2(a, shape):
        return jnp.zeros(shape, a.dtype).at[:a.shape[0], :a.shape[1]].set(a)

    packed = (
        pad2(w1, (state_size, hid)).astype(compute_dtype),
        pad2(b1, (1, hid)).astype(elementwise_dtype),
        pad2(w2, (hid, hid)).astype(compute_dtype),
        pad2(b2, (1, hid)).astype(elementwise_dtype),
        pad2(w3, (hid, out_pad)).astype(compute_dtype),
        pad2(b3, (1, out_pad)).astype(jnp.float32),   # final bias stays f32
    )
    return packed, action_size


def qnetwork_forward(x, packed, block_batch=4096):
    """Fused MLP forward. x: (batch, state_size) or (state_size,) float32."""
    (w1, b1, w2, b2, w3, b3), action_size = packed
    if x.ndim == 1:
        x = x[None, :]  # mirrors PyTorch MLP's unsqueeze(0)
    batch, state_size = x.shape
    out_pad = w3.shape[1]

    # Batch tiling: pad to a multiple of 16, pick the largest tile that fits
    # block_batch, but guarantee >= 2 grid steps for large batches so the
    # "parallel" axis can shard across v7x's two TensorCores.
    pb = _round_up(batch, 16)
    tb = min(block_batch, pb)
    if pb >= 512:
        tb = min(tb, _round_up((pb + 1) // 2, 16))
    pb = _round_up(pb, tb)

    xin = x
    if pb != batch:
        xin = jnp.zeros((pb, state_size), x.dtype).at[:batch].set(x)

    const = lambda a: pl.BlockSpec(a.shape, lambda i: (0, 0))
    out = pl.pallas_call(
        _mlp_kernel,
        out_shape=jax.ShapeDtypeStruct((pb, out_pad), jnp.float32),
        grid=(pb // tb,),
        in_specs=[
            pl.BlockSpec((tb, state_size), lambda i: (i, 0)),   # x: tiled
            const(w1), const(b1),                               # weights/biases:
            const(w2), const(b2),                               # resident in VMEM
            const(w3), const(b3),
        ],
        out_specs=pl.BlockSpec((tb, out_pad), lambda i: (i, 0)),
        compiler_params=pltpu.CompilerParams(
            dimension_semantics=("parallel",)),                 # megacore on v7x
    )(xin, w1, b1, w2, b2, w3, b3)

    if pb != batch or out_pad != action_size:
        out = out[:batch, :action_size]
    return out


def _reference_forward(x, packed):
    """Pure-JAX mirror of the kernel numerics (same dtypes, padded weights)."""
    (w1, b1, w2, b2, w3, b3), action_size = packed
    if x.ndim == 1:
        x = x[None, :]
    cd = w2.dtype
    h = jnp.dot(x.astype(w1.dtype), w1, preferred_element_type=jnp.float32)
    h = jnp.maximum(h.astype(b1.dtype) + b1, 0.0).astype(cd)
    h = jnp.dot(h, w2, preferred_element_type=jnp.float32)
    h = jnp.maximum(h.astype(b2.dtype) + b2, 0.0).astype(cd)
    out = jnp.dot(h, w3, preferred_element_type=jnp.float32) + b3
    return out[:, :action_size].astype(jnp.float32)


def _f32_reference_forward(x, raw_params):
    """Full-f32 reference (PyTorch semantics) for a loose sanity check."""
    w1, b1, w2, b2, w3, b3 = raw_params
    if x.ndim == 1:
        x = x[None, :]
    h = jnp.maximum(x @ w1 + b1, 0.0)
    h = jnp.maximum(h @ w2 + b2, 0.0)
    return h @ w3 + b3


if __name__ == "__main__":
    state_size = 8
    action_size = 4

    raw_params = init_qnetwork_params(state_size, action_size, seed=0)
    packed = pack_qnetwork_params(raw_params)

    key = jax.random.PRNGKey(0)
    k_small, k_big = jax.random.split(key)

    # Small batch (grid of 1 step, padded rows).
    x_small = jax.random.normal(k_small, (2, state_size), dtype=jnp.float32)
    out_small = jax.block_until_ready(qnetwork_forward(x_small, packed))
    assert out_small.shape == (2, action_size)
    ref_small = _reference_forward(x_small, packed)
    assert jnp.allclose(out_small, ref_small, atol=1e-3, rtol=1e-3)
    ref_f32 = _f32_reference_forward(x_small, raw_params)
    assert jnp.allclose(out_small, ref_f32, atol=0.1, rtol=0.1)

    # Larger batch (exercises the >=2-step grid path used for megacore).
    x_big = jax.random.normal(k_big, (640, state_size), dtype=jnp.float32)
    out_big = jax.block_until_ready(qnetwork_forward(x_big, packed))
    assert out_big.shape == (640, action_size)
    ref_big = _reference_forward(x_big, packed)
    assert jnp.allclose(out_big, ref_big, atol=1e-3, rtol=1e-3)

    print("KERNEL_OK")
</pallas_src>

<mosaic_0001>
module attributes {stable_mosaic.version = 11 : i64} {
  func.func @_mlp_kernel(%arg0: i32, %arg1: memref<16x8xf32, #tpu.memory_space<vmem>>, %arg2: memref<8x128xbf16, #tpu.memory_space<vmem>>, %arg3: memref<1x128xf32, #tpu.memory_space<vmem>>, %arg4: memref<128x128xbf16, #tpu.memory_space<vmem>>, %arg5: memref<1x128xf32, #tpu.memory_space<vmem>>, %arg6: memref<128x8xbf16, #tpu.memory_space<vmem>>, %arg7: memref<1x8xf32, #tpu.memory_space<vmem>>, %arg8: memref<16x8xf32, #tpu.memory_space<vmem>>) attributes {dimension_semantics = [#tpu.dimension_semantics<parallel>], iteration_bounds = array<i64: 1>, scalar_prefetch = 0 : i64, scratch_operands = 0 : i64, tpu.core_type = #tpu.core_type<tc>, window_params = [{transform_indices = @transform_0, window_bounds = array<i64: 16, 8>}, {pipeline_mode = #tpu.pipeline_mode<synchronous>, transform_indices = @transform_1, window_bounds = array<i64: 8, 128>}, {pipeline_mode = #tpu.pipeline_mode<synchronous>, transform_indices = @transform_2, window_bounds = array<i64: 1, 128>}, {pipeline_mode = #tpu.pipeline_mode<synchronous>, transform_indices = @transform_3, window_bounds = array<i64: 128, 128>}, {pipeline_mode = #tpu.pipeline_mode<synchronous>, transform_indices = @transform_4, window_bounds = array<i64: 1, 128>}, {pipeline_mode = #tpu.pipeline_mode<synchronous>, transform_indices = @transform_5, window_bounds = array<i64: 128, 8>}, {pipeline_mode = #tpu.pipeline_mode<synchronous>, transform_indices = @transform_6, window_bounds = array<i64: 1, 8>}, {transform_indices = @transform_7, window_bounds = array<i64: 16, 8>}]} {
    %c0 = arith.constant 0 : index
    %c0_0 = arith.constant 0 : index
    %0 = vector.load %arg1[%c0, %c0_0] : memref<16x8xf32, #tpu.memory_space<vmem>>, vector<16x8xf32>
    %1 = arith.truncf %0 : vector<16x8xf32> to vector<16x8xbf16>
    %c0_1 = arith.constant 0 : index
    %c0_2 = arith.constant 0 : index
    %2 = vector.load %arg2[%c0_1, %c0_2] : memref<8x128xbf16, #tpu.memory_space<vmem>>, vector<8x128xbf16>
    %cst = arith.constant dense<0.000000e+00> : vector<16x128xf32>
    %3 = tpu.matmul %1, %2, %cst {dimension_numbers = #tpu.dot_dimension_numbers<[1], [0], [0], [1], [0, 0, 1, 1], [], []>} : vector<16x8xbf16>, vector<8x128xbf16>, vector<16x128xf32> -> vector<16x128xf32>
    %c0_3 = arith.constant 0 : index
    %c0_4 = arith.constant 0 : index
    %4 = vector.load %arg3[%c0_3, %c0_4] : memref<1x128xf32, #tpu.memory_space<vmem>>, vector<1x128xf32>
    %5 = vector.broadcast %4 : vector<1x128xf32> to vector<16x128xf32>
    %6 = arith.addf %3, %5 : vector<16x128xf32>
    %cst_5 = arith.constant 0.000000e+00 : f32
    %7 = vector.broadcast %cst_5 : f32 to vector<16x128xf32>
    %8 = arith.maximumf %6, %7 : vector<16x128xf32>
    %9 = arith.truncf %8 : vector<16x128xf32> to vector<16x128xbf16>
    %c0_6 = arith.constant 0 : index
    %c0_7 = arith.constant 0 : index
    %10 = vector.load %arg4[%c0_6, %c0_7] : memref<128x128xbf16, #tpu.memory_space<vmem>>, vector<128x128xbf16>
    %cst_8 = arith.constant dense<0.000000e+00> : vector<16x128xf32>
    %11 = tpu.matmul %9, %10, %cst_8 {dimension_numbers = #tpu.dot_dimension_numbers<[1], [0], [0], [1], [0, 0, 1, 1], [], []>} : vector<16x128xbf16>, vector<128x128xbf16>, vector<16x128xf32> -> vector<16x128xf32>
    %c0_9 = arith.constant 0 : index
    %c0_10 = arith.constant 0 : index
    %12 = vector.load %arg5[%c0_9, %c0_10] : memref<1x128xf32, #tpu.memory_space<vmem>>, vector<1x128xf32>
    %13 = vector.broadcast %12 : vector<1x128xf32> to vector<16x128xf32>
    %14 = arith.addf %11, %13 : vector<16x128xf32>
    %cst_11 = arith.constant 0.000000e+00 : f32
    %15 = vector.broadcast %cst_11 : f32 to vector<16x128xf32>
    %16 = arith.maximumf %14, %15 : vector<16x128xf32>
    %17 = arith.truncf %16 : vector<16x128xf32> to vector<16x128xbf16>
    %c0_12 = arith.constant 0 : index
    %c0_13 = arith.constant 0 : index
    %18 = vector.load %arg6[%c0_12, %c0_13] : memref<128x8xbf16, #tpu.memory_space<vmem>>, vector<128x8xbf16>
    %cst_14 = arith.constant dense<0.000000e+00> : vector<16x8xf32>
    %19 = tpu.matmul %17, %18, %cst_14 {dimension_numbers = #tpu.dot_dimension_numbers<[1], [0], [0], [1], [0, 0, 1, 1], [], []>} : vector<16x128xbf16>, vector<128x8xbf16>, vector<16x8xf32> -> vector<16x8xf32>
    %c0_15 = arith.constant 0 : index
    %c0_16 = arith.constant 0 : index
    %20 = vector.load %arg7[%c0_15, %c0_16] : memref<1x8xf32, #tpu.memory_space<vmem>>, vector<1x8xf32>
    %21 = vector.broadcast %20 : vector<1x8xf32> to vector<16x8xf32>
    %22 = arith.addf %19, %21 : vector<16x8xf32>
    %c0_17 = arith.constant 0 : index
    %c0_18 = arith.constant 0 : index
    %23 = vector.load %arg8[%c0_17, %c0_18] : memref<16x8xf32, #tpu.memory_space<vmem>>, vector<16x8xf32>
    tpu.vector_store %arg8[%c0_17, %c0_18], %22 {strides = array<i32>} : memref<16x8xf32, #tpu.memory_space<vmem>>, vector<16x8xf32>,
    return
  }
  func.func @transform_0(%arg0: i32) -> (i32, i32) {
    %c0_i32 = arith.constant 0 : i32
    %c0_i32_0 = arith.constant 0 : i32
    return %arg0, %c0_i32 : i32, i32
  }
  func.func @transform_1(%arg0: i32) -> (i32, i32) {
    %c0_i32 = arith.constant 0 : i32
    %c0_i32_0 = arith.constant 0 : i32
    %c0_i32_1 = arith.constant 0 : i32
    return %c0_i32, %c0_i32_0 : i32, i32
  }
  func.func @transform_2(%arg0: i32) -> (i32, i32) {
    %c0_i32 = arith.constant 0 : i32
    %c0_i32_0 = arith.constant 0 : i32
    %c0_i32_1 = arith.constant 0 : i32
    return %c0_i32, %c0_i32_0 : i32, i32
  }
  func.func @transform_3(%arg0: i32) -> (i32, i32) {
    %c0_i32 = arith.constant 0 : i32
    %c0_i32_0 = arith.constant 0 : i32
    %c0_i32_1 = arith.constant 0 : i32
    return %c0_i32, %c0_i32_0 : i32, i32
  }
  func.func @transform_4(%arg0: i32) -> (i32, i32) {
    %c0_i32 = arith.constant 0 : i32
    %c0_i32_0 = arith.constant 0 : i32
    %c0_i32_1 = arith.constant 0 : i32
    return %c0_i32, %c0_i32_0 : i32, i32
  }
  func.func @transform_5(%arg0: i32) -> (i32, i32) {
    %c0_i32 = arith.constant 0 : i32
    %c0_i32_0 = arith.constant 0 : i32
    %c0_i32_1 = arith.constant 0 : i32
    return %c0_i32, %c0_i32_0 : i32, i32
  }
  func.func @transform_6(%arg0: i32) -> (i32, i32) {
    %c0_i32 = arith.constant 0 : i32
    %c0_i32_0 = arith.constant 0 : i32
    %c0_i32_1 = arith.constant 0 : i32
    return %c0_i32, %c0_i32_0 : i32, i32
  }
  func.func @transform_7(%arg0: i32) -> (i32, i32) {
    %c0_i32 = arith.constant 0 : i32
    %c0_i32_0 = arith.constant 0 : i32
    return %arg0, %c0_i32 : i32, i32
  }
}

</mosaic_0001>

<bundles_post_ra>
// kernel: tpu_custom_call.1
= control target key start
LH: loop header
LB: loop body
LE: loop exit
PB: predicated region body
PF: predicated region fallthrough
CT: control target
= control target key end

     0   :  { %vm39_vm0 = vcmask 1043456   ;;  %vm35_vm1 = vcmask 64512   ;;  %s432_s1 = inlined_call_operand.vmem [shape: bf16[8,128], index: 1, kind: input, shape index: {}]   ;;  %s433_s0 = inlined_call_operand.vmem [shape: f32[16,8], index: 0, kind: input, shape index: {}]   ;;  %s434_s3 = inlined_call_operand.vmem [shape: bf16[128,128], index: 3, kind: input, shape index: {}]   ;;  %s435_s2 = inlined_call_operand.vmem [shape: f32[1,128], index: 2, kind: input, shape index: {}]   ;;  %s436_s4 = inlined_call_operand.vmem [shape: f32[1,128], index: 4, kind: input, shape index: {}]   ;;  %s437_s5 = inlined_call_operand.vmem [shape: bf16[128,8], index: 5, kind: input, shape index: {}]   ;;  %s438_s6 = inlined_call_operand.vmem [shape: f32[1,8], index: 6, kind: input, shape index: {}]   ;;  %s439_s7 = inlined_call_operand.vmem [shape: f32[16,8], index: 7, kind: output, shape index: {}]  }
   0x1   :  { %v30_v0 = vld [vmem:[%s432_s1] sm:$0xf]  ;;  %v28_v2 = vld [vmem:[%s433_s0 + $0x8] sm:$0xff]  ;;  %v305_v5 = vld [vmem:[%s434_s3 + $0x38] sm:$0xff] }
   0x2   :  { %v27_v1 = vld [vmem:[%s433_s0] sm:$0xff]  ;;  %v41_v3 = vsel %vm39_vm0, %v30_v0, 0  ;;  %128 = vmatpush.bf16.msra.mxu1 %v305_v5  ;;  %v304_v6 = vld [vmem:[%s434_s3 + $0x30] sm:$0xff]  ;;  %v303_v7 = vld [vmem:[%s434_s3 + $0x28] sm:$0xff] }
   0x3   :  { %v29_v4 = vpack.c.bf16 %v28_v2, %v27_v1  ;;  %50 = vmatpush.bf16.msra.mxu0 %v41_v3  ;;  %v302_v8 = vld [vmem:[%s434_s3 + $0x20] sm:$0xff]  ;;  %v301_v9 = vld [vmem:[%s434_s3 + $0x18] sm:$0xff]  ;;  %v300_v10 = vld [vmem:[%s434_s3 + $0x10] sm:$0xff] }
   0x4   :  { %v299_v11 = vld [vmem:[%s434_s3 + $0x8] sm:$0xff]  ;;  %v298_v12 = vld [vmem:[%s434_s3] sm:$0xff]  ;;  %v313_v13 = vld [vmem:[%s437_s5 + $0x38] sm:$0xff] }
   0x5   :  { %213 = vmatpush.bf16.msra.mxu2 %v313_v13  ;;  %v312_v14 = vld [vmem:[%s437_s5 + $0x30] sm:$0xff]  ;;  %v311_v15 = vld [vmem:[%s437_s5 + $0x28] sm:$0xff]  ;;  %v310_v16 = vld [vmem:[%s437_s5 + $0x20] sm:$0xff] }
   0x6   :  { %233 = vmatmul.msk.bf16.vlgmr.msra.gmra.mxu0 %vm35_vm1, %v29_v4  ;;  %129 = vmatpush.bf16.msra.mxu1 %v304_v6  ;;  %v314_v18 = vld [vmem:[%s435_s2] ss:$0 sm:$0xff]  ;;  %v309_v25 = vld [vmem:[%s437_s5 + $0x18] sm:$0xff]  ;;  %v308_v26 = vld [vmem:[%s437_s5 + $0x10] sm:$0xff] }
   0x7   :  { %v307_v27 = vld [vmem:[%s437_s5 + $0x8] sm:$0xff]  ;;  %v306_v28 = vld [vmem:[%s437_s5] sm:$0xff] }
   0x8   :  { %v315_v30 = vld [vmem:[%s436_s4] ss:$0 sm:$0xff] }
   0x9   :  { %214 = vmatpush.bf16.msra.mxu2 %v312_v14  ;;  %v316_v37 = vld [vmem:[%s438_s6] ss:$0 sm:$0xff] }
   0xa   :  { %130 = vmatpush.bf16.msra.mxu1 %v303_v7 }
   0xd   :  { %215 = vmatpush.bf16.msra.mxu2 %v311_v15 }
   0xe   :  { %131 = vmatpush.bf16.msra.mxu1 %v302_v8 }
  0x11   :  { %216 = vmatpush.bf16.msra.mxu2 %v310_v16 }
  0x12   :  { %132 = vmatpush.bf16.msra.mxu1 %v301_v9 }
  0x15   :  { %217 = vmatpush.bf16.msra.mxu2 %v309_v25 }
  0x16   :  { %133 = vmatpush.bf16.msra.mxu1 %v300_v10 }
  0x19   :  { %218 = vmatpush.bf16.msra.mxu2 %v308_v26 }
  0x1a   :  { %134 = vmatpush.bf16.msra.mxu1 %v299_v11 }
  0x1d   :  { %219 = vmatpush.bf16.msra.mxu2 %v307_v27 }
  0x1e   :  { %135 = vmatpush.bf16.msra.mxu1 %v298_v12 }
  0x21   :  { %220 = vmatpush.bf16.msra.mxu2 %v306_v28 }
  0x83   :  { %v52_v17 = vpop.f32.mrf.mxu0 }
  0x84   :  { %v53_v19 = vadd.f32 %v314_v18, %v52_v17 }
  0x86   :  { %v57_v22 = vmax.f32 %v53_v19, 0.0 }
  0x8b   :  { %v54_v20 = vpop.f32.mrf.mxu0 }
  0x8c   :  { %v55_v21 = vadd.f32 %v314_v18, %v54_v20 }
  0x8e   :  { %v58_v23 = vmax.f32 %v55_v21, 0.0 }
  0x90   :  { %v59_v24 = vpack.c.bf16 %v58_v23, %v57_v22 }
  0x92   :  { %136 = vmatmul.bf16.vlgmr.msra.gmra.mxu1 %v59_v24 }
 0x10f   :  { %v137_v29 = vpop.f32.mrf.mxu1 }
 0x110   :  { %v138_v31 = vadd.f32 %v315_v30, %v137_v29 }
 0x112   :  { %v142_v34 = vmax.f32 %v138_v31, 0.0 }
 0x117   :  { %v139_v32 = vpop.f32.mrf.mxu1 }
 0x118   :  { %v140_v33 = vadd.f32 %v315_v30, %v139_v32 }
 0x11a   :  { %v143_v35 = vmax.f32 %v140_v33, 0.0 }
 0x11c   :  { %v144_v36 = vpack.c.bf16 %v143_v35, %v142_v34 }
 0x11e   :  { %221 = vmatmul.bf16.vlgmr.msra.gmra.mxu2 %v144_v36 }
 0x1a1   :  { %v222_v38 = vpop.f32.mrf.mxu2 }
 0x1a2   :  { %v223_v39 = vadd.f32 %v316_v37, %v222_v38 }
 0x1a4   :  { %227 = vst.msk [vmem:[%s439_s7] sm:$0xff] %vm35_vm1, %v223_v39 }
 0x1a9   :  { %v224_v40 = vpop.f32.mrf.mxu2 }
 0x1aa   :  { %v225_v41 = vadd.f32 %v316_v37, %v224_v40 }
 0x1ac   :  { %228 = vst.msk [vmem:[%s439_s7 + $0x8] sm:$0xff] %vm35_vm1, %v225_v41 }

</bundles_post_ra>
